<compile_context>
chip_gen: v7x
topology: tpu7x:2x2x1
jax: 0.10.0
libtpu: 0.0.40
codegen_flags: <defaults>
</compile_context>

<pallas_src>
import jax
import jax.numpy as jnp
from jax.experimental import pallas as pl
from jax.experimental.pallas import tpu as pltpu

HIDDEN = 400          # logical hidden size of the torch module
LANE = 128


def _round_up(n, m):
    return ((n + m - 1) // m) * m


def _pick_batch_tile(B):
    """Pick a batch tile that (a) is 256-512 rows when possible (multiple of
    256 preferred for v6e/v7x MXU rows, then 128 for v5e, then 8), (b) gives
    >= 2 grid steps once B >= 512 so v7x's 2nd TensorCore participates, and
    (c) divides B so the wrapper never pads/copies x in HBM.
    Returns 0 if no dividing tile exists (caller falls back to padding)."""
    if B < 512:
        return B                      # single full-extent tile, no pad
    cap = min(512, B // 2)            # >= 2 grid steps
    for step in (256, 128, 8):
        t = (cap // step) * step
        while t >= step:
            if B % t == 0:
                return t
            t -= step
    return 0


def encoder_kernel(x_ref, y_ref, w1x_ref, w1y_ref, b1_ref, wh_ref, bh_ref,
                   out_ref):
    """h = relu(x@W1x + y@W1y + b1); out = h @ [Wmu|Wlv|0] + [bmu|blv|0]."""
    x = x_ref[...].astype(jnp.bfloat16)
    y = y_ref[...].astype(jnp.bfloat16)
    h = (jnp.dot(x, w1x_ref[...], preferred_element_type=jnp.float32)
         + jnp.dot(y, w1y_ref[...], preferred_element_type=jnp.float32)
         + b1_ref[...])
    # ReLU in f32, then a single bf16 cast; only the bf16 copy stays live for
    # the head matmul (halves h store/load traffic and vreg pressure).
    h_bf16 = jnp.maximum(h, 0.0).astype(jnp.bfloat16)
    heads = (jnp.dot(h_bf16, wh_ref[...],
                     preferred_element_type=jnp.float32)
             + bh_ref[...])
    out_ref[...] = heads.astype(out_ref.dtype)


def encoder_forward(x, y_soft, params, latent_dim):
    """x: [B, C, H, W] float32 (NCHW), y_soft: [B, num_classes] float32."""
    B = x.shape[0]
    x_flat = x.reshape(B, -1).astype(jnp.float32)    # == x.view(x.size(0), -1)
    in_dim = x_flat.shape[1]
    nc = y_soft.shape[1]
    hidden = params["w1x"].shape[1]                  # padded hidden (512)
    out_pad = params["wh"].shape[1]                  # 2*latent padded to 128

    # Batch tiling without an HBM-copying jnp.pad of the dominant x stream.
    tb = _pick_batch_tile(B)
    if tb == 0:
        # Rare fallback (large batch with no multiple-of-8 divisor): pad
        # minimally to a multiple of 256.
        b_pad = _round_up(B, 256)
        tb = 256
        x_flat = jnp.pad(x_flat, ((0, b_pad - B), (0, 0)))
        y_soft = jnp.pad(y_soft, ((0, b_pad - B), (0, 0)))
    else:
        b_pad = B
    nb = b_pad // tb

    flops = 2 * b_pad * (in_dim + nc) * hidden + 2 * b_pad * hidden * out_pad
    bytes_accessed = (x_flat.size * 4 + y_soft.size * 4
                      + params["w1x"].size * 2 + params["w1y"].size * 2
                      + params["b1"].size * 4
                      + params["wh"].size * 2 + params["bh"].size * 4
                      + b_pad * out_pad * 4)

    out = pl.pallas_call(
        encoder_kernel,
        out_shape=jax.ShapeDtypeStruct((b_pad, out_pad), jnp.float32),
        grid=(nb,),
        in_specs=[
            pl.BlockSpec((tb, in_dim), lambda i: (i, 0)),       # x tile
            pl.BlockSpec((tb, nc), lambda i: (i, 0)),           # y tile
            pl.BlockSpec((in_dim, hidden), lambda i: (0, 0)),   # W1x (resident)
            pl.BlockSpec((nc, hidden), lambda i: (0, 0)),       # W1y (resident)
            pl.BlockSpec((1, hidden), lambda i: (0, 0)),        # b1
            pl.BlockSpec((hidden, out_pad), lambda i: (0, 0)),  # fused heads W
            pl.BlockSpec((1, out_pad), lambda i: (0, 0)),       # fused heads b
        ],
        out_specs=pl.BlockSpec((tb, out_pad), lambda i: (i, 0)),
        compiler_params=pltpu.CompilerParams(
            dimension_semantics=("parallel",)),
        cost_estimate=pl.CostEstimate(
            flops=flops, transcendentals=0, bytes_accessed=bytes_accessed),
    )(x_flat, y_soft, params["w1x"], params["w1y"], params["b1"],
      params["wh"], params["bh"])

    mu = out[:B, :latent_dim]
    logvar = out[:B, latent_dim:2 * latent_dim]
    return mu, logvar


def init_params(key, input_dim, latent_dim, num_classes, hidden=HIDDEN):
    """nn.Linear-style init (uniform +-1/sqrt(fan_in)), then kernel packing:

    - w1 [in1, hidden] split into w1x [input_dim, .] / w1y [nc, .]
    - hidden zero-padded 400 -> 512 (lane / MXU-K alignment; identity math)
    - wmu|wlv fused + zero-padded to [hidden_pad, round_up(2*latent, 128)]
    - weights cast to bf16 (native MXU input); biases kept f32.
    """
    ks = jax.random.split(key, 6)
    in1 = input_dim + num_classes
    hidden_pad = _round_up(hidden, LANE)             # 400 -> 512

    def lin(kw, kb, fan_in, fan_out):
        bound = 1.0 / jnp.sqrt(fan_in)
        w = jax.random.uniform(kw, (fan_in, fan_out), jnp.float32, -bound, bound)
        b = jax.random.uniform(kb, (1, fan_out), jnp.float32, -bound, bound)
        return w, b

    w1, b1 = lin(ks[0], ks[1], in1, hidden)
    wmu, bmu = lin(ks[2], ks[3], hidden, latent_dim)
    wlv, blv = lin(ks[4], ks[5], hidden, latent_dim)

    # Pad hidden dimension with zeros (ReLU(0+0)=0 and the matching head rows
    # are zero, so results are bit-identical to the unpadded math).
    w1p = jnp.zeros((in1, hidden_pad), jnp.float32).at[:, :hidden].set(w1)
    b1p = jnp.zeros((1, hidden_pad), jnp.float32).at[:, :hidden].set(b1)

    out_pad = max(LANE, _round_up(2 * latent_dim, LANE))
    wh = jnp.zeros((hidden_pad, out_pad), jnp.float32)
    wh = (wh.at[:hidden, :latent_dim].set(wmu)
            .at[:hidden, latent_dim:2 * latent_dim].set(wlv))
    bh = jnp.zeros((1, out_pad), jnp.float32)
    bh = bh.at[:, :latent_dim].set(bmu).at[:, latent_dim:2 * latent_dim].set(blv)

    return {
        "w1x": w1p[:input_dim].astype(jnp.bfloat16),
        "w1y": w1p[input_dim:].astype(jnp.bfloat16),
        "b1": b1p,
        "wh": wh.astype(jnp.bfloat16),
        "bh": bh,
    }


if __name__ == "__main__":
    # Small, module-consistent shapes: x [B=8, C=1, H=16, W=16] -> input_dim=256
    B, C, H, W = 8, 1, 16, 16
    input_dim = C * H * W
    num_classes = 10
    latent_dim = 32

    key = jax.random.PRNGKey(0)
    kx, ky, kp = jax.random.split(key, 3)

    x = jax.random.normal(kx, (B, C, H, W), jnp.float32)
    y_logits = jax.random.normal(ky, (B, num_classes), jnp.float32)
    y_soft = jax.nn.softmax(y_logits, axis=-1)

    params = init_params(kp, input_dim, latent_dim, num_classes)

    fwd = jax.jit(encoder_forward, static_argnums=(3,))
    mu, logvar = fwd(x, y_soft, params, latent_dim)
    jax.block_until_ready((mu, logvar))

    # Pure-JAX reference with identical numerics (bf16 weights, f32 accumulate).
    # NOTE: parity with the f32 torch module is ~1e-3 relative due to bf16
    # weights/activations; the reference mirrors the kernel numerics exactly.
    xb = x.reshape(B, -1).astype(jnp.bfloat16)
    yb = y_soft.astype(jnp.bfloat16)
    h_ref = jnp.maximum(
        jnp.dot(xb, params["w1x"], preferred_element_type=jnp.float32)
        + jnp.dot(yb, params["w1y"], preferred_element_type=jnp.float32)
        + params["b1"], 0.0)
    heads_ref = (jnp.dot(h_ref.astype(jnp.bfloat16), params["wh"],
                         preferred_element_type=jnp.float32) + params["bh"])
    mu_ref = heads_ref[:, :latent_dim]
    lv_ref = heads_ref[:, latent_dim:2 * latent_dim]

    assert jnp.allclose(mu, mu_ref, atol=1e-3, rtol=1e-3)
    assert jnp.allclose(logvar, lv_ref, atol=1e-3, rtol=1e-3)

    # TODO(synk): for microsecond-scale batches (like this B=8 demo) the next
    # win is fusing the reparameterization step into this same pallas_call to
    # amortize the fixed launch/DMA-prime overhead.
    print("KERNEL_OK")
</pallas_src>

<mosaic_0001>
module attributes {stable_mosaic.version = 11 : i64} {
  func.func @encoder_kernel(%arg0: i32, %arg1: memref<8x256xf32, #tpu.memory_space<vmem>>, %arg2: memref<8x10xf32, #tpu.memory_space<vmem>>, %arg3: memref<256x512xbf16, #tpu.memory_space<vmem>>, %arg4: memref<10x512xbf16, #tpu.memory_space<vmem>>, %arg5: memref<1x512xf32, #tpu.memory_space<vmem>>, %arg6: memref<512x128xbf16, #tpu.memory_space<vmem>>, %arg7: memref<1x128xf32, #tpu.memory_space<vmem>>, %arg8: memref<8x128xf32, #tpu.memory_space<vmem>>) attributes {dimension_semantics = [#tpu.dimension_semantics<parallel>], iteration_bounds = array<i64: 1>, scalar_prefetch = 0 : i64, scratch_operands = 0 : i64, tpu.core_type = #tpu.core_type<tc>, window_params = [{transform_indices = @transform_0, window_bounds = array<i64: 8, 256>}, {transform_indices = @transform_1, window_bounds = array<i64: 8, 10>}, {pipeline_mode = #tpu.pipeline_mode<synchronous>, transform_indices = @transform_2, window_bounds = array<i64: 256, 512>}, {pipeline_mode = #tpu.pipeline_mode<synchronous>, transform_indices = @transform_3, window_bounds = array<i64: 10, 512>}, {pipeline_mode = #tpu.pipeline_mode<synchronous>, transform_indices = @transform_4, window_bounds = array<i64: 1, 512>}, {pipeline_mode = #tpu.pipeline_mode<synchronous>, transform_indices = @transform_5, window_bounds = array<i64: 512, 128>}, {pipeline_mode = #tpu.pipeline_mode<synchronous>, transform_indices = @transform_6, window_bounds = array<i64: 1, 128>}, {transform_indices = @transform_7, window_bounds = array<i64: 8, 128>}]} {
    %c0 = arith.constant 0 : index
    %c0_0 = arith.constant 0 : index
    %0 = vector.load %arg1[%c0, %c0_0] : memref<8x256xf32, #tpu.memory_space<vmem>>, vector<8x256xf32>
    %1 = arith.truncf %0 : vector<8x256xf32> to vector<8x256xbf16>
    %c0_1 = arith.constant 0 : index
    %c0_2 = arith.constant 0 : index
    %2 = vector.load %arg2[%c0_1, %c0_2] : memref<8x10xf32, #tpu.memory_space<vmem>>, vector<8x10xf32>
    %3 = arith.truncf %2 : vector<8x10xf32> to vector<8x10xbf16>
    %c0_3 = arith.constant 0 : index
    %c0_4 = arith.constant 0 : index
    %4 = vector.load %arg3[%c0_3, %c0_4] : memref<256x512xbf16, #tpu.memory_space<vmem>>, vector<256x512xbf16>
    %cst = arith.constant dense<0.000000e+00> : vector<8x512xf32>
    %5 = tpu.matmul %1, %4, %cst {dimension_numbers = #tpu.dot_dimension_numbers<[1], [0], [0], [1], [0, 0, 1, 1], [], []>} : vector<8x256xbf16>, vector<256x512xbf16>, vector<8x512xf32> -> vector<8x512xf32>
    %c0_5 = arith.constant 0 : index
    %c0_6 = arith.constant 0 : index
    %6 = vector.load %arg4[%c0_5, %c0_6] : memref<10x512xbf16, #tpu.memory_space<vmem>>, vector<10x512xbf16>
    %cst_7 = arith.constant dense<0.000000e+00> : vector<8x512xf32>
    %7 = tpu.matmul %3, %6, %cst_7 {dimension_numbers = #tpu.dot_dimension_numbers<[1], [0], [0], [1], [0, 0, 1, 1], [], []>} : vector<8x10xbf16>, vector<10x512xbf16>, vector<8x512xf32> -> vector<8x512xf32>
    %8 = arith.addf %5, %7 : vector<8x512xf32>
    %c0_8 = arith.constant 0 : index
    %c0_9 = arith.constant 0 : index
    %9 = vector.load %arg5[%c0_8, %c0_9] : memref<1x512xf32, #tpu.memory_space<vmem>>, vector<1x512xf32>
    %10 = vector.broadcast %9 : vector<1x512xf32> to vector<8x512xf32>
    %11 = arith.addf %8, %10 : vector<8x512xf32>
    %cst_10 = arith.constant 0.000000e+00 : f32
    %12 = vector.broadcast %cst_10 : f32 to vector<8x512xf32>
    %13 = arith.maximumf %11, %12 : vector<8x512xf32>
    %14 = arith.truncf %13 : vector<8x512xf32> to vector<8x512xbf16>
    %c0_11 = arith.constant 0 : index
    %c0_12 = arith.constant 0 : index
    %15 = vector.load %arg6[%c0_11, %c0_12] : memref<512x128xbf16, #tpu.memory_space<vmem>>, vector<512x128xbf16>
    %cst_13 = arith.constant dense<0.000000e+00> : vector<8x128xf32>
    %16 = tpu.matmul %14, %15, %cst_13 {dimension_numbers = #tpu.dot_dimension_numbers<[1], [0], [0], [1], [0, 0, 1, 1], [], []>} : vector<8x512xbf16>, vector<512x128xbf16>, vector<8x128xf32> -> vector<8x128xf32>
    %c0_14 = arith.constant 0 : index
    %c0_15 = arith.constant 0 : index
    %17 = vector.load %arg7[%c0_14, %c0_15] : memref<1x128xf32, #tpu.memory_space<vmem>>, vector<1x128xf32>
    %18 = vector.broadcast %17 : vector<1x128xf32> to vector<8x128xf32>
    %19 = arith.addf %16, %18 : vector<8x128xf32>
    %c0_16 = arith.constant 0 : index
    %c0_17 = arith.constant 0 : index
    %20 = vector.load %arg8[%c0_16, %c0_17] : memref<8x128xf32, #tpu.memory_space<vmem>>, vector<8x128xf32>
    tpu.vector_store %arg8[%c0_16, %c0_17], %19 {strides = array<i32>} : memref<8x128xf32, #tpu.memory_space<vmem>>, vector<8x128xf32>,
    return
  }
  func.func @transform_0(%arg0: i32) -> (i32, i32) {
    %c0_i32 = arith.constant 0 : i32
    %c0_i32_0 = arith.constant 0 : i32
    return %arg0, %c0_i32 : i32, i32
  }
  func.func @transform_1(%arg0: i32) -> (i32, i32) {
    %c0_i32 = arith.constant 0 : i32
    %c0_i32_0 = arith.constant 0 : i32
    return %arg0, %c0_i32 : i32, i32
  }
  func.func @transform_2(%arg0: i32) -> (i32, i32) {
    %c0_i32 = arith.constant 0 : i32
    %c0_i32_0 = arith.constant 0 : i32
    %c0_i32_1 = arith.constant 0 : i32
    return %c0_i32, %c0_i32_0 : i32, i32
  }
  func.func @transform_3(%arg0: i32) -> (i32, i32) {
    %c0_i32 = arith.constant 0 : i32
    %c0_i32_0 = arith.constant 0 : i32
    %c0_i32_1 = arith.constant 0 : i32
    return %c0_i32, %c0_i32_0 : i32, i32
  }
  func.func @transform_4(%arg0: i32) -> (i32, i32) {
    %c0_i32 = arith.constant 0 : i32
    %c0_i32_0 = arith.constant 0 : i32
    %c0_i32_1 = arith.constant 0 : i32
    return %c0_i32, %c0_i32_0 : i32, i32
  }
  func.func @transform_5(%arg0: i32) -> (i32, i32) {
    %c0_i32 = arith.constant 0 : i32
    %c0_i32_0 = arith.constant 0 : i32
    %c0_i32_1 = arith.constant 0 : i32
    return %c0_i32, %c0_i32_0 : i32, i32
  }
  func.func @transform_6(%arg0: i32) -> (i32, i32) {
    %c0_i32 = arith.constant 0 : i32
    %c0_i32_0 = arith.constant 0 : i32
    %c0_i32_1 = arith.constant 0 : i32
    return %c0_i32, %c0_i32_0 : i32, i32
  }
  func.func @transform_7(%arg0: i32) -> (i32, i32) {
    %c0_i32 = arith.constant 0 : i32
    %c0_i32_0 = arith.constant 0 : i32
    return %arg0, %c0_i32 : i32, i32
  }
}

</mosaic_0001>

<bundles_post_ra>
// kernel: encoder_forward.1
= control target key start
LH: loop header
LB: loop body
LE: loop exit
PB: predicated region body
PF: predicated region fallthrough
CT: control target
= control target key end

     0   :  { %12 = vsyncpa [#allocation3], 0  ;;  %s1469_s0 = inlined_call_operand.vmem [shape: f32[8,256], index: 0, kind: input, shape index: {}]   ;;  %s1470_s1 = inlined_call_operand.vmem [shape: f32[8,10], index: 1, kind: input, shape index: {}]   ;;  %s1471_s2 = inlined_call_operand.hbm [shape: bf16[256,512], index: 2, kind: input, shape index: {}]   ;;  %s1472_s3 = inlined_call_operand.vmem [shape: bf16[10,512], index: 3, kind: input, shape index: {}]   ;;  %s1473_s4 = inlined_call_operand.vmem [shape: f32[1,512], index: 4, kind: input, shape index: {}]   ;;  %s1474_s5 = inlined_call_operand.hbm [shape: bf16[512,128], index: 5, kind: input, shape index: {}]   ;;  %s1475_s6 = inlined_call_operand.vmem [shape: f32[1,128], index: 6, kind: input, shape index: {}]   ;;  %s1476_s7 = inlined_call_operand.vmem [shape: f32[8,128], index: 7, kind: output, shape index: {}]  }
   0x1   :  { %13 = vsyncpa [#allocation5], 0  ;;  %s1368_s24 = smov [#allocation2]   ;;  %s1320_s28 = scalar_lea.hbm %s1471_s2, 8192 }
   0x2   :  { %s23_s25 = sshll.u32 %s1368_s24, 4  ;;  %p1321_p0 = scmp.ne.s32.totalorder %s1471_s2, %s1320_s28  ;;  %s24_s25 = int_to_ptr.vmem [resolvable:$true] %s23_s25 }
   0x3   :  { %p1324_p1 = scmp.lt.u32.totalorder %s1320_s28, %s1471_s2 }
   0x5   :  { %p1326_p2 = pnand %p1324_p1, %p1321_p0 }
   0x7   :  { %1329 = shalt.err (!%p1326_p2)
}
   0x8   :  { %s1330_s10 = scalar_lea.vmem %s24_s25, 8192  ;;  %p1335_p4 = scmp.lt.s32.totalorder %s24_s25, %s24_s25 }
   0x9   :  { %p1331_p3 = scmp.ne.s32.totalorder %s24_s25, %s1330_s10  ;;  %p1336_p5 = scmp.lt.s32.totalorder %s1330_s10, %s1330_s10 }
   0xb   :  { %p1337_p6 = por %p1336_p5, %p1335_p4 }
   0xd   :  { %p1338_p7 = pnand %p1337_p6, %p1331_p3 }
   0xf   :  { %1341 = shalt.err (!%p1338_p7)
}
  0x10   :  { %s1369_s11 = smov 256   ;;  %s1370_s12 = smov 16  }
  0x11   :  { %29 = dma.hbm_to_vmem [thread:$0]  %s1471_s2, 8192, %s24_s25, [#allocation3], %s1369_s11, %s1369_s11, %s1370_s12  }
  0x12   :  { %s1371_s15 = smov [#allocation4]   ;;  %s1342_s19 = scalar_lea.hbm %s1474_s5, 4096 }
  0x13   :  { %s39_s16 = sshll.u32 %s1371_s15, 4  ;;  %p1343_p8 = scmp.ne.s32.totalorder %s1474_s5, %s1342_s19  ;;  %s40_s16 = int_to_ptr.vmem [resolvable:$true] %s39_s16 }
  0x14   :  { %p1346_p9 = scmp.lt.u32.totalorder %s1342_s19, %s1474_s5 }
  0x16   :  { %p1348_p10 = pnand %p1346_p9, %p1343_p8 }
  0x18   :  { %1351 = shalt.err (!%p1348_p10)
}
  0x19   :  { %s1352_s24 = scalar_lea.vmem %s40_s16, 4096  ;;  %p1357_p12 = scmp.lt.s32.totalorder %s40_s16, %s40_s16 }
  0x1a   :  { %p1353_p11 = scmp.ne.s32.totalorder %s40_s16, %s1352_s24  ;;  %p1358_p13 = scmp.lt.s32.totalorder %s1352_s24, %s1352_s24 }
  0x1c   :  { %p1359_p0 = por %p1358_p13, %p1357_p12 }
  0x1e   :  { %p1360_p1 = pnand %p1359_p0, %p1353_p11 }
  0x20   :  { %1363 = shalt.err (!%p1360_p1)
}
  0x21   :  { %s1372_s2 = smov 64   ;;  %s1373_s25 = smov 4  }
  0x22   :  { %45 = dma.hbm_to_vmem [thread:$0]  %s1474_s5, 4096, %s40_s16, [#allocation5], %s1372_s2, %s1372_s2, %s1373_s25  }
  0x23   :  { %1364 = dma.done.wait [#allocation3], 8192  }
  0x24   :  { %1365 = vsyncadd [#allocation3], 4294959104 }
  0x25   :  { %1366 = dma.done.wait [#allocation5], 4096  }
  0x26   :  { %1367 = vsyncadd [#allocation5], 4294963200  ;;  %v1374_v0 = vmov 0   ;;  %vm149_vm0 = vcmask 1044480   ;;  %v59_v5 = vld [vmem:[%s1470_s1] sm:$0xff]  ;;  %vm145_vm1 = vcmask 80896  }
  0x27   :  { %194 = vmatprep.mubr.bf16.mxu0 %v1374_v0  ;;  %235 = vmatprep.mubr.bf16.mxu1 %v1374_v0  ;;  %v1186_v1 = vld [vmem:[%s1472_s3 + $0x4] ss:$16 sps:$4 sm:$0x1f]   ;;  %v1188_v2 = vld [vmem:[%s1472_s3 + $0xc] ss:$16 sps:$4 sm:$0x1f]   ;;  %v60_v8 = vpack.c.bf16 %v59_v5, %v59_v5 }
  0x28   :  { %1034 = vmatprep.subr.msk.bf16.mxu0 %vm149_vm0, %v1186_v1  ;;  %v1190_v3 = vld [vmem:[%s1472_s3] ss:$16 sps:$4 sm:$0x1f]   ;;  %v1191_v4 = vld [vmem:[%s1472_s3 + $0x8] ss:$16 sps:$4 sm:$0x1f]   ;;  %1036 = vmatprep.subr.msk.bf16.mxu1 %vm149_vm0, %v1188_v2 }
  0x29   :  { %v151_v6 = vsel %vm149_vm0, %v1190_v3, 0  ;;  %v157_v7 = vsel %vm149_vm0, %v1191_v4, 0  ;;  %v1192_v9 = vld [vmem:[#allocation2] ss:$16 sps:$4 sm:$0xff]   ;;  %v1194_v10 = vld [vmem:[#allocation2 + $0x4] ss:$16 sps:$4 sm:$0xff]  }
  0x2a   :  { %163 = vmatpush1.bf16.msra.mxu0 %v151_v6  ;;  %204 = vmatpush1.bf16.msra.mxu1 %v157_v7  ;;  %v1195_v11 = vld [vmem:[#allocation2 + $0x8] ss:$16 sps:$4 sm:$0xff]   ;;  %v1197_v12 = vld [vmem:[#allocation2 + $0xc] ss:$16 sps:$4 sm:$0xff]   ;;  %v1200_v13 = vld [vmem:[#allocation2 + $0x24] ss:$16 sps:$4 sm:$0xff]  }
  0x2b   :  { %564 = vmatprep.subr.bf16.mxu0 %v1194_v10  ;;  %v1198_v14 = vld [vmem:[#allocation2 + $0x20] ss:$16 sps:$4 sm:$0xff]   ;;  %v1203_v15 = vld [vmem:[#allocation2 + $0x2c] ss:$16 sps:$4 sm:$0xff]   ;;  %605 = vmatprep.subr.bf16.mxu1 %v1197_v12  ;;  %v1201_v16 = vld [vmem:[#allocation2 + $0x28] ss:$16 sps:$4 sm:$0xff]  }
  0x2c   :  { %v1206_v17 = vld [vmem:[#allocation2 + $0x44] ss:$16 sps:$4 sm:$0xff]   ;;  %v1209_v18 = vld [vmem:[#allocation2 + $0x4c] ss:$16 sps:$4 sm:$0xff]   ;;  %v1204_v19 = vld [vmem:[#allocation2 + $0x40] ss:$16 sps:$4 sm:$0xff]  }
  0x2d   :  { %1035 = vmatmul.mubr.msk.bf16.vlgmr.msra.gmra.mrb[0].mxu0 %vm145_vm1, %v60_v8  ;;  %1037 = vmatmul.mubr.msk.bf16.vlgmr.msra.gmra.mrb[0].mxu1 %vm145_vm1, %v60_v8  ;;  %v1207_v20 = vld [vmem:[#allocation2 + $0x48] ss:$16 sps:$4 sm:$0xff]   ;;  %v1212_v21 = vld [vmem:[#allocation2 + $0x64] ss:$16 sps:$4 sm:$0xff]   ;;  %v1215_v22 = vld [vmem:[#allocation2 + $0x6c] ss:$16 sps:$4 sm:$0xff]  }
  0x2e   :  { %565 = vmatpush1.bf16.msra.mxu0 %v1192_v9  ;;  %606 = vmatpush1.bf16.msra.mxu1 %v1195_v11  ;;  %v1210_v23 = vld [vmem:[#allocation2 + $0x60] ss:$16 sps:$4 sm:$0xff]   ;;  %v1213_v24 = vld [vmem:[#allocation2 + $0x68] ss:$16 sps:$4 sm:$0xff]   ;;  %v1218_v25 = vld [vmem:[#allocation2 + $0x84] ss:$16 sps:$4 sm:$0xff]  }
  0x2f   :  { %566 = vmatprep.subr.bf16.mxu0 %v1200_v13  ;;  %607 = vmatprep.subr.bf16.mxu1 %v1203_v15  ;;  %v1221_v26 = vld [vmem:[#allocation2 + $0x8c] ss:$16 sps:$4 sm:$0xff]   ;;  %v1216_v27 = vld [vmem:[#allocation2 + $0x80] ss:$16 sps:$4 sm:$0xff]   ;;  %v1219_v28 = vld [vmem:[#allocation2 + $0x88] ss:$16 sps:$4 sm:$0xff]  }
  0x30   :  { %v1224_v29 = vld [vmem:[#allocation2 + $0xa4] ss:$16 sps:$4 sm:$0xff]   ;;  %v1227_v30 = vld [vmem:[#allocation2 + $0xac] ss:$16 sps:$4 sm:$0xff]   ;;  %v1222_v31 = vld [vmem:[#allocation2 + $0xa0] ss:$16 sps:$4 sm:$0xff]  }
  0x31   :  { %v1225_v32 = vld [vmem:[#allocation2 + $0xa8] ss:$16 sps:$4 sm:$0xff]   ;;  %v1230_v33 = vld [vmem:[#allocation2 + $0xc4] ss:$16 sps:$4 sm:$0xff]   ;;  %v1233_v34 = vld [vmem:[#allocation2 + $0xcc] ss:$16 sps:$4 sm:$0xff]  }
  0x32   :  { %567 = vmatpush1.bf16.msra.mxu0 %v1198_v14  ;;  %608 = vmatpush1.bf16.msra.mxu1 %v1201_v16  ;;  %v1228_v35 = vld [vmem:[#allocation2 + $0xc0] ss:$16 sps:$4 sm:$0xff]   ;;  %v1231_v36 = vld [vmem:[#allocation2 + $0xc8] ss:$16 sps:$4 sm:$0xff]   ;;  %v1236_v37 = vld [vmem:[#allocation2 + $0xe4] ss:$16 sps:$4 sm:$0xff]  }
  0x33   :  { %568 = vmatprep.subr.bf16.mxu0 %v1206_v17  ;;  %609 = vmatprep.subr.bf16.mxu1 %v1209_v18  ;;  %v1239_v38 = vld [vmem:[#allocation2 + $0xec] ss:$16 sps:$4 sm:$0xff]   ;;  %v1234_v39 = vld [vmem:[#allocation2 + $0xe0] ss:$16 sps:$4 sm:$0xff]   ;;  %v1237_v40 = vld [vmem:[#allocation2 + $0xe8] ss:$16 sps:$4 sm:$0xff]  }
  0x34   :  { %v1242_v41 = vld [vmem:[#allocation2 + $0x104] ss:$16 sps:$4 sm:$0xff]   ;;  %v1245_v42 = vld [vmem:[#allocation2 + $0x10c] ss:$16 sps:$4 sm:$0xff]   ;;  %v1240_v43 = vld [vmem:[#allocation2 + $0x100] ss:$16 sps:$4 sm:$0xff]  }
  0x35   :  { %v1243_v44 = vld [vmem:[#allocation2 + $0x108] ss:$16 sps:$4 sm:$0xff]   ;;  %v1248_v45 = vld [vmem:[#allocation2 + $0x124] ss:$16 sps:$4 sm:$0xff]   ;;  %v1251_v46 = vld [vmem:[#allocation2 + $0x12c] ss:$16 sps:$4 sm:$0xff]  }
  0x36   :  { %569 = vmatpush1.bf16.msra.mxu0 %v1204_v19  ;;  %610 = vmatpush1.bf16.msra.mxu1 %v1207_v20  ;;  %v1246_v47 = vld [vmem:[#allocation2 + $0x120] ss:$16 sps:$4 sm:$0xff]   ;;  %v1249_v48 = vld [vmem:[#allocation2 + $0x128] ss:$16 sps:$4 sm:$0xff]   ;;  %v1254_v49 = vld [vmem:[#allocation2 + $0x144] ss:$16 sps:$4 sm:$0xff]  }
  0x37   :  { %570 = vmatprep.subr.bf16.mxu0 %v1212_v21  ;;  %611 = vmatprep.subr.bf16.mxu1 %v1215_v22  ;;  %v1257_v50 = vld [vmem:[#allocation2 + $0x14c] ss:$16 sps:$4 sm:$0xff]   ;;  %v1252_v51 = vld [vmem:[#allocation2 + $0x140] ss:$16 sps:$4 sm:$0xff]   ;;  %v1255_v52 = vld [vmem:[#allocation2 + $0x148] ss:$16 sps:$4 sm:$0xff]  }
  0x38   :  { %v1260_v53 = vld [vmem:[#allocation2 + $0x164] ss:$16 sps:$4 sm:$0xff]   ;;  %v1263_v54 = vld [vmem:[#allocation2 + $0x16c] ss:$16 sps:$4 sm:$0xff]   ;;  %v1258_v56 = vld [vmem:[#allocation2 + $0x160] ss:$16 sps:$4 sm:$0xff]  }
  0x39   :  { %v56_v55 = vld [vmem:[%s1469_s0 + $0x8] sm:$0xff]  ;;  %v1266_v59 = vld [vmem:[#allocation2 + $0x184] ss:$16 sps:$4 sm:$0xff]   ;;  %v1264_v61 = vld [vmem:[#allocation2 + $0x180] ss:$16 sps:$4 sm:$0xff]  }
  0x3a   :  { %571 = vmatpush1.bf16.msra.mxu0 %v1210_v23  ;;  %612 = vmatpush1.bf16.msra.mxu1 %v1213_v24  ;;  %v58_v57 = vpack.c.bf16 %v56_v55, %v56_v55  ;;  %v1261_v58 = vld [vmem:[#allocation2 + $0x168] ss:$16 sps:$4 sm:$0xff]   ;;  %v1269_v60 = vld [vmem:[#allocation2 + $0x18c] ss:$16 sps:$4 sm:$0xff]   ;;  %v1272_v63 = vld [vmem:[#allocation2 + $0x1a4] ss:$16 sps:$4 sm:$0xff]  }
  0x3b   :  { %572 = vmatprep.subr.bf16.mxu0 %v1218_v25  ;;  %613 = vmatprep.subr.bf16.mxu1 %v1221_v26  ;;  %v1267_v62 = vld [vmem:[#allocation2 + $0x188] ss:$16 sps:$4 sm:$0xff]   ;;  %v1275_v0 = vld [vmem:[#allocation2 + $0x1ac] ss:$16 sps:$4 sm:$0xff]   ;;  %v1270_v1 = vld [vmem:[#allocation2 + $0x1a0] ss:$16 sps:$4 sm:$0xff]  }
  0x3c   :  { %596 = vmatprep.mubr.bf16.mxu0 %v58_v57  ;;  %637 = vmatprep.mubr.bf16.mxu1 %v58_v57  ;;  %v1273_v2 = vld [vmem:[#allocation2 + $0x1a8] ss:$16 sps:$4 sm:$0xff]   ;;  %v1278_v3 = vld [vmem:[#allocation2 + $0x1c4] ss:$16 sps:$4 sm:$0xff]   ;;  %v1281_v4 = vld [vmem:[#allocation2 + $0x1cc] ss:$16 sps:$4 sm:$0xff]  }
  0x3d   :  { %v1276_v5 = vld [vmem:[#allocation2 + $0x1c0] ss:$16 sps:$4 sm:$0xff]   ;;  %v1279_v6 = vld [vmem:[#allocation2 + $0x1c8] ss:$16 sps:$4 sm:$0xff]   ;;  %v1284_v7 = vld [vmem:[#allocation2 + $0x1e4] ss:$16 sps:$4 sm:$0xff]  }
  0x3e   :  { %573 = vmatpush1.bf16.msra.mxu0 %v1216_v27  ;;  %614 = vmatpush1.bf16.msra.mxu1 %v1219_v28  ;;  %v1287_v8 = vld [vmem:[#allocation2 + $0x1ec] ss:$16 sps:$4 sm:$0xff]   ;;  %v1282_v9 = vld [vmem:[#allocation2 + $0x1e0] ss:$16 sps:$4 sm:$0xff]   ;;  %v1285_v11 = vld [vmem:[#allocation2 + $0x1e8] ss:$16 sps:$4 sm:$0xff]  }
  0x3f   :  { %574 = vmatprep.subr.bf16.mxu0 %v1224_v29  ;;  %615 = vmatprep.subr.bf16.mxu1 %v1227_v30  ;;  %v55_v10 = vld [vmem:[%s1469_s0] sm:$0xff]  ;;  %v1292_v17 = vld [vmem:[#allocation4 + $0x48] sm:$0xff]   ;;  %v1296_v21 = vld [vmem:[#allocation4 + $0x50] sm:$0xff]  }
  0x40   :  { %v57_v12 = vpack.c.bf16 %v55_v10, %v55_v10  ;;  %v1288_v13 = vld [vmem:[#allocation4 + $0x40] sm:$0xff]   ;;  %v1293_v18 = vld [vmem:[#allocation4 + $0xc8] sm:$0xff]   ;;  %v1297_v22 = vld [vmem:[#allocation4 + $0xd0] sm:$0xff]  }
  0x41   :  { %v1289_v14 = vld [vmem:[#allocation4 + $0xc0] sm:$0xff]   ;;  %v1294_v19 = vld [vmem:[#allocation4 + $0x8] sm:$0xff]   ;;  %v1298_v23 = vld [vmem:[#allocation4 + $0x10] sm:$0xff]  }
  0x42   :  { %575 = vmatpush1.bf16.msra.mxu0 %v1222_v31  ;;  %616 = vmatpush1.bf16.msra.mxu1 %v1225_v32  ;;  %v1290_v15 = vld [vmem:[#allocation4] sm:$0xff]   ;;  %v1295_v20 = vld [vmem:[#allocation4 + $0x88] sm:$0xff]   ;;  %v1299_v24 = vld [vmem:[#allocation4 + $0x90] sm:$0xff]  }
  0x43   :  { %576 = vmatprep.subr.bf16.mxu0 %v1230_v33  ;;  %617 = vmatprep.subr.bf16.mxu1 %v1233_v34  ;;  %v1291_v16 = vld [vmem:[#allocation4 + $0x80] sm:$0xff]   ;;  %v1300_v25 = vld [vmem:[#allocation4 + $0x58] sm:$0xff]   ;;  %v1308_v33 = vld [vmem:[#allocation4 + $0x68] sm:$0xff]  }
  0x44   :  { %v1301_v26 = vld [vmem:[#allocation4 + $0xd8] sm:$0xff]   ;;  %v1304_v29 = vld [vmem:[#allocation4 + $0x60] sm:$0xff]   ;;  %v1309_v34 = vld [vmem:[#allocation4 + $0xe8] sm:$0xff]  }
  0x45   :  { %v1302_v27 = vld [vmem:[#allocation4 + $0x18] sm:$0xff]   ;;  %v1305_v30 = vld [vmem:[#allocation4 + $0xe0] sm:$0xff]  }
  0x46   :  { %577 = vmatpush1.bf16.msra.mxu0 %v1228_v35  ;;  %618 = vmatpush1.bf16.msra.mxu1 %v1231_v36  ;;  %v1303_v28 = vld [vmem:[#allocation4 + $0x98] sm:$0xff]   ;;  %v1306_v31 = vld [vmem:[#allocation4 + $0x20] sm:$0xff]   ;;  %v1310_v35 = vld [vmem:[#allocation4 + $0x28] sm:$0xff]  }
  0x47   :  { %578 = vmatprep.subr.bf16.mxu0 %v1236_v37  ;;  %619 = vmatprep.subr.bf16.mxu1 %v1239_v38  ;;  %v1307_v32 = vld [vmem:[#allocation4 + $0xa0] sm:$0xff]   ;;  %v1311_v36 = vld [vmem:[#allocation4 + $0xa8] sm:$0xff]   ;;  %v1312_v37 = vld [vmem:[#allocation4 + $0x70] sm:$0xff]  }
  0x48   :  { %v1313_v38 = vld [vmem:[#allocation4 + $0xf0] sm:$0xff]  }
  0x4a   :  { %579 = vmatpush1.bf16.msra.mxu0 %v1234_v39  ;;  %620 = vmatpush1.bf16.msra.mxu1 %v1237_v40  ;;  %v1314_v39 = vld [vmem:[#allocation4 + $0x30] sm:$0xff]  }
  0x4b   :  { %580 = vmatprep.subr.bf16.mxu0 %v1242_v41  ;;  %621 = vmatprep.subr.bf16.mxu1 %v1245_v42  ;;  %v1315_v40 = vld [vmem:[#allocation4 + $0xb0] sm:$0xff]   ;;  %v1316_v41 = vld [vmem:[#allocation4 + $0x78] sm:$0xff]  }
  0x4c   :  { %v1317_v42 = vld [vmem:[#allocation4 + $0xf8] sm:$0xff]  }
  0x4e   :  { %581 = vmatpush1.bf16.msra.mxu0 %v1240_v43  ;;  %622 = vmatpush1.bf16.msra.mxu1 %v1243_v44  ;;  %v1318_v43 = vld [vmem:[#allocation4 + $0x38] sm:$0xff]  }
  0x4f   :  { %582 = vmatprep.subr.bf16.mxu0 %v1248_v45  ;;  %623 = vmatprep.subr.bf16.mxu1 %v1251_v46  ;;  %v1319_v44 = vld [vmem:[#allocation4 + $0xb8] sm:$0xff]  }
  0x52   :  { %583 = vmatpush1.bf16.msra.mxu0 %v1246_v47  ;;  %624 = vmatpush1.bf16.msra.mxu1 %v1249_v48 }
  0x53   :  { %584 = vmatprep.subr.bf16.mxu0 %v1254_v49  ;;  %625 = vmatprep.subr.bf16.mxu1 %v1257_v50 }
  0x56   :  { %585 = vmatpush1.bf16.msra.mxu0 %v1252_v51  ;;  %626 = vmatpush1.bf16.msra.mxu1 %v1255_v52 }
  0x57   :  { %586 = vmatprep.subr.bf16.mxu0 %v1260_v53  ;;  %627 = vmatprep.subr.bf16.mxu1 %v1263_v54  ;;  %v648_v53 = vlaneseq }
  0x59   :  { %v649_v54 = vshrl.u32 %v648_v53, 7 }
  0x5a   :  { %587 = vmatpush1.bf16.msra.mxu0 %v1258_v56  ;;  %628 = vmatpush1.bf16.msra.mxu1 %v1261_v58  ;;  %v646_v56 = vld [vmem:[%s1473_s4] sm:$0xf] }
  0x5b   :  { %588 = vmatprep.subr.bf16.mxu0 %v1266_v59  ;;  %629 = vmatprep.subr.bf16.mxu1 %v1269_v60  ;;  %v650_v55 = vsub.s32 0, %v649_v54  ;;  %v658_v57 = vsub.s32 2, %v649_v54  ;;  %v654_v58 = vsub.s32 1, %v649_v54  ;;  %v662_v59 = vsub.s32 3, %v649_v54 }
  0x5d   :  { %v651_v60 = vrot.slane %v646_v56, %v650_v55 }
  0x5e   :  { %589 = vmatpush1.bf16.msra.mxu0 %v1264_v61  ;;  %630 = vmatpush1.bf16.msra.mxu1 %v1267_v62  ;;  %v659_v62 = vrot.slane %v646_v56, %v658_v57 }
  0x5f   :  { %590 = vmatprep.subr.bf16.mxu0 %v1272_v63  ;;  %631 = vmatprep.subr.bf16.mxu1 %v1275_v0  ;;  %v655_v63 = vrot.slane %v646_v56, %v654_v58 }
  0x62   :  { %591 = vmatpush1.bf16.msra.mxu0 %v1270_v1  ;;  %632 = vmatpush1.bf16.msra.mxu1 %v1273_v2 }
  0x63   :  { %592 = vmatprep.subr.bf16.mxu0 %v1278_v3  ;;  %633 = vmatprep.subr.bf16.mxu1 %v1281_v4  ;;  %v663_v3 = vrot.slane %v646_v56, %v662_v59 }
  0x66   :  { %593 = vmatpush1.bf16.msra.mxu0 %v1276_v5  ;;  %634 = vmatpush1.bf16.msra.mxu1 %v1279_v6 }
  0x67   :  { %594 = vmatprep.subr.bf16.mxu0 %v1284_v7  ;;  %635 = vmatprep.subr.bf16.mxu1 %v1287_v8 }
  0x6a   :  { %595 = vmatpush1.bf16.msra.mxu0 %v1282_v9  ;;  %636 = vmatpush1.bf16.msra.mxu1 %v1285_v11 }
  0x6b   :  { %1135 = vmatprep.subr.bf16.mxu0 %v1288_v13  ;;  %1157 = vmatprep.subr.bf16.mxu1 %v1289_v14 }
  0x6d   :  { %597 = vmatmul.mubr.bf16.vlgmr.msra.gmra.mrb[4].mxu0 %v57_v12  ;;  %638 = vmatmul.mubr.bf16.vlgmr.msra.gmra.mrb[4].mxu1 %v57_v12 }
  0x6e   :  { %1136 = vmatpush3.bf16.msra.mxu0 %v1290_v15  ;;  %1158 = vmatpush3.bf16.msra.mxu1 %v1291_v16 }
  0x6f   :  { %1137 = vmatprep.subr.bf16.mxu0 %v1292_v17  ;;  %1159 = vmatprep.subr.bf16.mxu1 %v1293_v18 }
  0x72   :  { %1138 = vmatpush3.bf16.msra.mxu0 %v1294_v19  ;;  %1160 = vmatpush3.bf16.msra.mxu1 %v1295_v20 }
  0x73   :  { %1139 = vmatprep.subr.bf16.mxu0 %v1296_v21  ;;  %1161 = vmatprep.subr.bf16.mxu1 %v1297_v22 }
  0x76   :  { %1140 = vmatpush3.bf16.msra.mxu0 %v1298_v23  ;;  %1162 = vmatpush3.bf16.msra.mxu1 %v1299_v24 }
  0x77   :  { %1141 = vmatprep.subr.bf16.mxu0 %v1300_v25  ;;  %1163 = vmatprep.subr.bf16.mxu1 %v1301_v26  ;;  %v1102_v26 = vld [vmem:[%s1475_s6] ss:$0 sm:$0xff] }
  0x7a   :  { %1142 = vmatpush3.bf16.msra.mxu0 %v1302_v27  ;;  %1164 = vmatpush3.bf16.msra.mxu1 %v1303_v28 }
  0x7b   :  { %1143 = vmatprep.subr.bf16.mxu0 %v1304_v29  ;;  %1165 = vmatprep.subr.bf16.mxu1 %v1305_v30 }
  0x7e   :  { %1144 = vmatpush3.bf16.msra.mxu0 %v1306_v31  ;;  %1166 = vmatpush3.bf16.msra.mxu1 %v1307_v32 }
  0x7f   :  { %1145 = vmatprep.subr.bf16.mxu0 %v1308_v33  ;;  %1167 = vmatprep.subr.bf16.mxu1 %v1309_v34 }
  0x82   :  { %1146 = vmatpush3.bf16.msra.mxu0 %v1310_v35  ;;  %1168 = vmatpush3.bf16.msra.mxu1 %v1311_v36 }
  0x83   :  { %1147 = vmatprep.subr.bf16.mxu0 %v1312_v37  ;;  %1169 = vmatprep.subr.bf16.mxu1 %v1313_v38 }
  0x86   :  { %1148 = vmatpush3.bf16.msra.mxu0 %v1314_v39  ;;  %1170 = vmatpush3.bf16.msra.mxu1 %v1315_v40 }
  0x87   :  { %1149 = vmatprep.subr.bf16.mxu0 %v1316_v41  ;;  %1171 = vmatprep.subr.bf16.mxu1 %v1317_v42 }
  0x8a   :  { %1150 = vmatpush3.bf16.msra.mxu0 %v1318_v43  ;;  %1172 = vmatpush3.bf16.msra.mxu1 %v1319_v44 }
 0x100   :  { %v196_v45 = vpop.f32.mrb[0].mxu0  ;;  %v237_v46 = vpop.f32.mrb[0].mxu1 }
 0x101   :  { %v198_v47 = vpop.f32.mrb[1].mxu0  ;;  %v239_v48 = vpop.f32.mrb[1].mxu1 }
 0x102   :  { %v200_v49 = vpop.f32.mrb[2].mxu0  ;;  %v241_v50 = vpop.f32.mrb[2].mxu1 }
 0x103   :  { %v201_v51 = vpop.f32.mrb[3].mxu0  ;;  %v242_v52 = vpop.f32.mrb[3].mxu1 }
 0x140   :  { %v598_v61 = vpop.f32.mrb[4].mxu0  ;;  %v639_v1 = vpop.f32.mrb[4].mxu1 }
 0x141   :  { %v599_v0 = vadd.f32 %v598_v61, %v196_v45  ;;  %v600_v2 = vpop.f32.mrb[5].mxu0  ;;  %v640_v4 = vadd.f32 %v639_v1, %v237_v46  ;;  %v641_v6 = vpop.f32.mrb[5].mxu1 }
 0x142   :  { %v601_v5 = vadd.f32 %v600_v2, %v198_v47  ;;  %v602_v7 = vpop.f32.mrb[6].mxu0  ;;  %v642_v9 = vadd.f32 %v641_v6, %v239_v48  ;;  %v643_v10 = vpop.f32.mrb[6].mxu1 }
 0x143   :  { %v668_v8 = vadd.f32 %v651_v60, %v599_v0  ;;  %v603_v11 = vpop.f32.mrb[7].mxu0  ;;  %v670_v12 = vadd.f32 %v659_v62, %v640_v4  ;;  %v644_v14 = vpop.f32.mrb[7].mxu1 }
 0x144   :  { %v669_v13 = vadd.f32 %v655_v63, %v601_v5  ;;  %v671_v16 = vadd.f32 %v663_v3, %v642_v9 }
 0x145   :  { %v672_v15 = vmax.f32 %v668_v8, 0.0  ;;  %v674_v17 = vmax.f32 %v670_v12, 0.0 }
 0x146   :  { %v673_v18 = vmax.f32 %v669_v13, 0.0  ;;  %v675_v19 = vmax.f32 %v671_v16, 0.0 }
 0x147   :  { %v676_v21 = vpack.c.bf16 %v672_v15, %v672_v15  ;;  %v678_v23 = vpack.c.bf16 %v674_v17, %v674_v17 }
 0x148   :  { %v677_v20 = vpack.c.bf16 %v673_v18, %v673_v18  ;;  %v679_v22 = vpack.c.bf16 %v675_v19, %v675_v19 }
 0x14a   :  { %975 = vmatprep.mubr.bf16.mxu0 %v677_v20  ;;  %1015 = vmatprep.mubr.bf16.mxu1 %v679_v22 }
 0x14b   :  { %976 = vmatmul.mubr.bf16.vlgmr.msra.gmra.mrb[8].mxu0 %v676_v21  ;;  %1016 = vmatmul.mubr.bf16.vlgmr.msra.gmra.mrb[8].mxu1 %v678_v23 }
 0x21e   :  { %v1151_v24 = vpop.f32.mrb[8].mxu0  ;;  %v1173_v25 = vpop.f32.mrb[8].mxu1 }
 0x21f   :  { %v1152_v27 = vpop.f32.mrb[9].mxu0  ;;  %v1174_v29 = vpop.f32.mrb[9].mxu1 }
 0x220   :  { %v1153_v28 = vadd.f32 %v1152_v27, %v1151_v24  ;;  %v1154_v30 = vpop.f32.mrb[10].mxu0  ;;  %v1175_v31 = vadd.f32 %v1174_v29, %v1173_v25  ;;  %v1176_v32 = vpop.f32.mrb[10].mxu1 }
 0x221   :  { %v1155_v33 = vpop.f32.mrb[11].mxu0  ;;  %v1177_v35 = vpop.f32.mrb[11].mxu1 }
 0x222   :  { %v978_v34 = vadd.f32 %v1153_v28, %v1102_v26 }
 0x224   :  { %v1018_v36 = vadd.f32 %v1175_v31, %v978_v34 }
 0x226   :  { %1023 = vst [vmem:[%s1476_s7] sm:$0xff] %v1018_v36 }
 0x227   :  { %1028 = vsyncpa [#allocation3], 1 }
 0x228   :  { %1029 = vsyncpa [#allocation5], 1 }

</bundles_post_ra>
